<compile_context>
chip_gen: v6e
topology: v6e:2x2x1
jax: 0.10.0
libtpu: 0.0.40
codegen_flags: <defaults>
</compile_context>

<pallas_src>
import math
from functools import partial

import jax
import jax.numpy as jnp
from jax import lax
from jax.experimental import pallas as pl
from jax.experimental.pallas import tpu as pltpu

ALPHA_LO = math.exp(-1.0 / 5.0)   # RLIFLayer.alpha_lim[0]
ALPHA_HI = math.exp(-1.0 / 25.0)  # RLIFLayer.alpha_lim[1]
BN_EPS = 1e-5                     # nn.BatchNorm1d default eps


def _round_up(n, m):
    return ((n + m - 1) // m) * m


# ----------------------------------------------------------------------------
# Fused kernel: Linear -> BatchNorm (batch stats) -> RLIF recurrence
# ----------------------------------------------------------------------------
def _make_rlif_kernel(T, threshold, normalize):
    def kernel(x_ref, wt_ref, v_ref, alpha_ref, gamma_ref, beta_ref,
               ut0_ref, st0_ref, s_ref, wx_ref):
        B, _, Hp = s_ref.shape

        # Feedforward: Wx = x @ W^T, bf16 operands, f32 accumulate (MXU).
        wx = jnp.dot(x_ref[...], wt_ref[...],
                     preferred_element_type=jnp.float32)          # (B*T, Hp)

        if normalize:
            # BatchNorm1d over the B*T rows, training-mode batch statistics
            # (biased variance); gamma/beta are the affine parameters.
            mean = jnp.mean(wx, axis=0, keepdims=True)
            var = jnp.mean(jnp.square(wx - mean), axis=0, keepdims=True)
            wx = (wx - mean) * lax.rsqrt(var + BN_EPS)
            wx = wx * gamma_ref[...] + beta_ref[...]

        # (B*T, Hp) -> (B, T, Hp): tile-aligned split of the sublane dim
        # (T is a multiple of 8 here), so no relayout.
        wx_ref[...] = wx.reshape(B, T, Hp)

        alpha = jnp.clip(alpha_ref[...], ALPHA_LO, ALPHA_HI)       # (1, Hp)
        one_minus_alpha = 1.0 - alpha                              # hoisted

        ut = ut0_ref[...]                                          # (B, Hp)
        st = st0_ref[...]                                          # (B, Hp)

        # Statically unrolled temporal recurrence (T is compile-time).
        for t in range(T):
            rec = jnp.dot(st.astype(jnp.bfloat16), v_ref[...],
                          preferred_element_type=jnp.float32)      # st @ V
            ut = alpha * (ut - st) + one_minus_alpha * (wx_ref[:, t, :] + rec)
            st = (ut > threshold).astype(jnp.float32)              # boxcar fwd
            s_ref[:, t, :] = st

    return kernel


@partial(jax.jit, static_argnames=("threshold", "normalize"))
def rlif_forward(x, W, V_nodiag, alpha, gamma, beta, ut0, st0, *,
                 threshold=1.0, normalize=True):
    """x: (B, T, I) f32; W: (H, I) torch-Linear layout; V_nodiag: (H, H).
    Returns spikes s of shape (B, T, H)."""
    B, T, I = x.shape
    H = W.shape[0]
    Hp = _round_up(H, 128)
    Ip = _round_up(I, 128)

    # Natural (B*T, I) layout -- a pure reshape, no transpose / HBM copy.
    xf = x.reshape(B * T, I)
    if Ip != I:
        xf = jnp.pad(xf, ((0, 0), (0, Ip - I)))
    xf = xf.astype(jnp.bfloat16)

    # Zero-padded, pre-transposed weights in bf16 (lane-dense Hp = mult. of 128).
    wt = jnp.zeros((Ip, Hp), jnp.float32).at[:I, :H].set(W.T).astype(jnp.bfloat16)
    vp = jnp.zeros((Hp, Hp), jnp.float32).at[:H, :H].set(V_nodiag).astype(jnp.bfloat16)
    alpha_p = jnp.full((1, Hp), ALPHA_LO, jnp.float32).at[0, :H].set(alpha)
    gamma_p = jnp.zeros((1, Hp), jnp.float32).at[0, :H].set(gamma)
    beta_p = jnp.zeros((1, Hp), jnp.float32).at[0, :H].set(beta)
    ut0_p = jnp.zeros((B, Hp), jnp.float32).at[:, :H].set(ut0)
    st0_p = jnp.zeros((B, Hp), jnp.float32).at[:, :H].set(st0)

    vmem = pltpu.MemorySpace.VMEM
    kernel = _make_rlif_kernel(T, float(threshold), bool(normalize))
    s_pad = pl.pallas_call(
        kernel,
        out_shape=jax.ShapeDtypeStruct((B, T, Hp), jnp.float32),
        in_specs=[pl.BlockSpec(memory_space=vmem)] * 8,
        out_specs=pl.BlockSpec(memory_space=vmem),
        scratch_shapes=[pltpu.VMEM((B, T, Hp), jnp.float32)],
        compiler_params=pltpu.CompilerParams(vmem_limit_bytes=32 * 1024 * 1024),
    )(xf, wt, vp, alpha_p, gamma_p, beta_p, ut0_p, st0_p)

    # Padded hidden lanes are identically zero; slice them off.
    return s_pad[:, :, :H]


# ----------------------------------------------------------------------------
# Module wrapper (parameter setup in plain JAX, mirrors RLIFLayer.__init__)
# ----------------------------------------------------------------------------
class RLIFLayerPallas:
    def __init__(self, input_size, hidden_size, batch_size, threshold=1.0,
                 dropout=0.0, normalization='batchnorm', use_bias=False,
                 bidirectional=False, extra_features=None, *, key):
        self.input_size = int(input_size)
        self.hidden_size = int(hidden_size)
        self.batch_size = batch_size
        self.threshold = float(threshold)
        # TODO(synk): bidirectional flip/concat, use_bias, dropout>0 and
        # layernorm branches are not implemented (defaults modeled).
        assert not bidirectional and not use_bias and dropout == 0.0
        assert normalization in ('batchnorm', 'none', '')
        self.normalize = normalization == 'batchnorm'

        kW, kV, ka, kr = jax.random.split(key, 4)
        # nn.Linear default init range for the feedforward weight.
        bound = 1.0 / math.sqrt(self.input_size)
        self.W = jax.random.uniform(kW, (self.hidden_size, self.input_size),
                                    jnp.float32, -bound, bound)
        # nn.init.orthogonal_ for the recurrent weight.
        a = jax.random.normal(kV, (self.hidden_size, self.hidden_size), jnp.float32)
        q, r = jnp.linalg.qr(a)
        d = jnp.diag(r)
        self.V = q * jnp.where(d >= 0, 1.0, -1.0)[None, :]
        self.alpha = jax.random.uniform(ka, (self.hidden_size,), jnp.float32,
                                        ALPHA_LO, ALPHA_HI)
        self.gamma = jnp.ones((self.hidden_size,), jnp.float32)   # BN weight
        self.beta = jnp.zeros((self.hidden_size,), jnp.float32)   # BN bias
        self._state_key = kr

    def __call__(self, x):
        B = x.shape[0]
        # TODO(synk): torch draws ut/st from the global RNG every forward; a
        # deterministic jax.random draw stands in (not bit-equal to torch.rand).
        k1, k2 = jax.random.split(self._state_key)
        ut0 = jax.random.uniform(k1, (B, self.hidden_size), jnp.float32)
        st0 = jax.random.uniform(k2, (B, self.hidden_size), jnp.float32)
        # V.weight.clone().fill_diagonal_(0)
        V_nodiag = self.V * (1.0 - jnp.eye(self.hidden_size, dtype=jnp.float32))
        return rlif_forward(x, self.W, V_nodiag, self.alpha, self.gamma,
                            self.beta, ut0, st0, threshold=self.threshold,
                            normalize=self.normalize)


if __name__ == "__main__":
    key = jax.random.PRNGKey(0)
    k_in, k_param = jax.random.split(key)

    B, T, I, H = 4, 8, 128, 32       # (batch, time, input_size), hidden_size
    # Spike-train-like binary input (deterministic).
    x = jax.random.bernoulli(k_in, 0.3, (B, T, I)).astype(jnp.float32)

    layer = RLIFLayerPallas(input_size=I, hidden_size=H, batch_size=B,
                            key=k_param)
    s = layer(x)
    jax.block_until_ready(s)

    assert s.shape == (B, T, H)
    assert bool(jnp.all((s == 0.0) | (s == 1.0)))   # outputs are spikes
    print("KERNEL_OK")
</pallas_src>

<mosaic_0001>
module attributes {stable_mosaic.version = 11 : i64} {
  func.func @kernel(%arg0: memref<32x128xbf16, #tpu.memory_space<vmem>>, %arg1: memref<128x128xbf16, #tpu.memory_space<vmem>>, %arg2: memref<128x128xbf16, #tpu.memory_space<vmem>>, %arg3: memref<1x128xf32, #tpu.memory_space<vmem>>, %arg4: memref<1x128xf32, #tpu.memory_space<vmem>>, %arg5: memref<1x128xf32, #tpu.memory_space<vmem>>, %arg6: memref<4x128xf32, #tpu.memory_space<vmem>>, %arg7: memref<4x128xf32, #tpu.memory_space<vmem>>, %arg8: memref<4x8x128xf32, #tpu.memory_space<vmem>>, %arg9: memref<4x8x128xf32, #tpu.memory_space<vmem>>) attributes {dimension_semantics = [], scalar_prefetch = 0 : i64, scratch_operands = 1 : i64, tpu.core_type = #tpu.core_type<tc>} {
    %c0 = arith.constant 0 : index
    %c0_0 = arith.constant 0 : index
    %0 = vector.load %arg0[%c0, %c0_0] : memref<32x128xbf16, #tpu.memory_space<vmem>>, vector<32x128xbf16>
    %c0_1 = arith.constant 0 : index
    %c0_2 = arith.constant 0 : index
    %1 = vector.load %arg1[%c0_1, %c0_2] : memref<128x128xbf16, #tpu.memory_space<vmem>>, vector<128x128xbf16>
    %cst = arith.constant dense<0.000000e+00> : vector<32x128xf32>
    %2 = tpu.matmul %0, %1, %cst {dimension_numbers = #tpu.dot_dimension_numbers<[1], [0], [0], [1], [0, 0, 1, 1], [], []>} : vector<32x128xbf16>, vector<128x128xbf16>, vector<32x128xf32> -> vector<32x128xf32>
    %cst_3 = arith.constant dense<0.000000e+00> : vector<128xf32>
    %3 = vector.multi_reduction <add>, %2, %cst_3 [0] : vector<32x128xf32> to vector<128xf32>
    %4 = vector.shape_cast %3 : vector<128xf32> to vector<1x128xf32>
    %cst_4 = arith.constant 3.200000e+01 : f32
    %5 = vector.broadcast %cst_4 : f32 to vector<1x128xf32>
    %6 = arith.divf %4, %5 : vector<1x128xf32>
    %7 = vector.broadcast %6 : vector<1x128xf32> to vector<32x128xf32>
    %8 = arith.subf %2, %7 : vector<32x128xf32>
    %9 = arith.mulf %8, %8 : vector<32x128xf32>
    %cst_5 = arith.constant dense<0.000000e+00> : vector<128xf32>
    %10 = vector.multi_reduction <add>, %9, %cst_5 [0] : vector<32x128xf32> to vector<128xf32>
    %11 = vector.shape_cast %10 : vector<128xf32> to vector<1x128xf32>
    %cst_6 = arith.constant 3.200000e+01 : f32
    %12 = vector.broadcast %cst_6 : f32 to vector<1x128xf32>
    %13 = arith.divf %11, %12 : vector<1x128xf32>
    %14 = vector.broadcast %6 : vector<1x128xf32> to vector<32x128xf32>
    %15 = arith.subf %2, %14 : vector<32x128xf32>
    %cst_7 = arith.constant 9.99999974E-6 : f32
    %16 = vector.broadcast %cst_7 : f32 to vector<1x128xf32>
    %17 = arith.addf %13, %16 : vector<1x128xf32>
    %18 = math.rsqrt %17 : vector<1x128xf32>
    %19 = vector.broadcast %18 : vector<1x128xf32> to vector<32x128xf32>
    %20 = arith.mulf %15, %19 : vector<32x128xf32>
    %c0_8 = arith.constant 0 : index
    %c0_9 = arith.constant 0 : index
    %21 = vector.load %arg4[%c0_8, %c0_9] : memref<1x128xf32, #tpu.memory_space<vmem>>, vector<1x128xf32>
    %22 = vector.broadcast %21 : vector<1x128xf32> to vector<32x128xf32>
    %23 = arith.mulf %20, %22 : vector<32x128xf32>
    %c0_10 = arith.constant 0 : index
    %c0_11 = arith.constant 0 : index
    %24 = vector.load %arg5[%c0_10, %c0_11] : memref<1x128xf32, #tpu.memory_space<vmem>>, vector<1x128xf32>
    %25 = vector.broadcast %24 : vector<1x128xf32> to vector<32x128xf32>
    %26 = arith.addf %23, %25 : vector<32x128xf32>
    %27 = vector.shape_cast %26 : vector<32x128xf32> to vector<4x8x128xf32>
    %c0_12 = arith.constant 0 : index
    %c0_13 = arith.constant 0 : index
    %c0_14 = arith.constant 0 : index
    %28 = vector.load %arg9[%c0_12, %c0_13, %c0_14] : memref<4x8x128xf32, #tpu.memory_space<vmem>>, vector<4x8x128xf32>
    tpu.vector_store %arg9[%c0_12, %c0_13, %c0_14], %27 {strides = array<i32>} : memref<4x8x128xf32, #tpu.memory_space<vmem>>, vector<4x8x128xf32>,
    %c0_15 = arith.constant 0 : index
    %c0_16 = arith.constant 0 : index
    %29 = vector.load %arg3[%c0_15, %c0_16] : memref<1x128xf32, #tpu.memory_space<vmem>>, vector<1x128xf32>
    %cst_17 = arith.constant 0.818730771 : f32
    %cst_18 = arith.constant 0.960789442 : f32
    %30 = vector.broadcast %cst_17 : f32 to vector<1x128xf32>
    %31 = arith.maximumf %30, %29 : vector<1x128xf32>
    %32 = vector.broadcast %cst_18 : f32 to vector<1x128xf32>
    %33 = arith.minimumf %32, %31 : vector<1x128xf32>
    %cst_19 = arith.constant 1.000000e+00 : f32
    %34 = vector.broadcast %cst_19 : f32 to vector<1x128xf32>
    %35 = arith.subf %34, %33 : vector<1x128xf32>
    %c0_20 = arith.constant 0 : index
    %c0_21 = arith.constant 0 : index
    %36 = vector.load %arg6[%c0_20, %c0_21] : memref<4x128xf32, #tpu.memory_space<vmem>>, vector<4x128xf32>
    %c0_22 = arith.constant 0 : index
    %c0_23 = arith.constant 0 : index
    %37 = vector.load %arg7[%c0_22, %c0_23] : memref<4x128xf32, #tpu.memory_space<vmem>>, vector<4x128xf32>
    %38 = arith.truncf %37 : vector<4x128xf32> to vector<4x128xbf16>
    %c0_24 = arith.constant 0 : index
    %c0_25 = arith.constant 0 : index
    %39 = vector.load %arg2[%c0_24, %c0_25] : memref<128x128xbf16, #tpu.memory_space<vmem>>, vector<128x128xbf16>
    %cst_26 = arith.constant dense<0.000000e+00> : vector<4x128xf32>
    %40 = tpu.matmul %38, %39, %cst_26 {dimension_numbers = #tpu.dot_dimension_numbers<[1], [0], [0], [1], [0, 0, 1, 1], [], []>} : vector<4x128xbf16>, vector<128x128xbf16>, vector<4x128xf32> -> vector<4x128xf32>
    %41 = arith.subf %36, %37 : vector<4x128xf32>
    %42 = vector.broadcast %33 : vector<1x128xf32> to vector<4x128xf32>
    %43 = arith.mulf %42, %41 : vector<4x128xf32>
    %c0_27 = arith.constant 0 : index
    %c0_28 = arith.constant 0 : index
    %c0_29 = arith.constant 0 : index
    %44 = vector.load %arg9[%c0_27, %c0_28, %c0_29] : memref<4x8x128xf32, #tpu.memory_space<vmem>>, vector<4x1x128xf32>
    %45 = vector.shape_cast %44 : vector<4x1x128xf32> to vector<4x128xf32>
    %46 = arith.addf %45, %40 : vector<4x128xf32>
    %47 = vector.broadcast %35 : vector<1x128xf32> to vector<4x128xf32>
    %48 = arith.mulf %47, %46 : vector<4x128xf32>
    %49 = arith.addf %43, %48 : vector<4x128xf32>
    %cst_30 = arith.constant 1.000000e+00 : f32
    %50 = vector.broadcast %cst_30 : f32 to vector<4x128xf32>
    %51 = arith.cmpf ogt, %49, %50 : vector<4x128xf32>
    %52 = arith.extui %51 : vector<4x128xi1> to vector<4x128xi32>
    %53 = arith.sitofp %52 : vector<4x128xi32> to vector<4x128xf32>
    %c0_31 = arith.constant 0 : index
    %c0_32 = arith.constant 0 : index
    %c0_33 = arith.constant 0 : index
    %54 = vector.load %arg8[%c0_31, %c0_32, %c0_33] : memref<4x8x128xf32, #tpu.memory_space<vmem>>, vector<4x1x128xf32>
    %55 = vector.shape_cast %54 : vector<4x1x128xf32> to vector<4x128xf32>
    %56 = vector.shape_cast %53 : vector<4x128xf32> to vector<4x1x128xf32>
    tpu.vector_store %arg8[%c0_31, %c0_32, %c0_33], %56 {strides = array<i32>} : memref<4x8x128xf32, #tpu.memory_space<vmem>>, vector<4x1x128xf32>,
    %57 = arith.truncf %53 : vector<4x128xf32> to vector<4x128xbf16>
    %c0_34 = arith.constant 0 : index
    %c0_35 = arith.constant 0 : index
    %58 = vector.load %arg2[%c0_34, %c0_35] : memref<128x128xbf16, #tpu.memory_space<vmem>>, vector<128x128xbf16>
    %cst_36 = arith.constant dense<0.000000e+00> : vector<4x128xf32>
    %59 = tpu.matmul %57, %58, %cst_36 {dimension_numbers = #tpu.dot_dimension_numbers<[1], [0], [0], [1], [0, 0, 1, 1], [], []>} : vector<4x128xbf16>, vector<128x128xbf16>, vector<4x128xf32> -> vector<4x128xf32>
    %60 = arith.subf %49, %53 : vector<4x128xf32>
    %61 = vector.broadcast %33 : vector<1x128xf32> to vector<4x128xf32>
    %62 = arith.mulf %61, %60 : vector<4x128xf32>
    %c0_37 = arith.constant 0 : index
    %c1 = arith.constant 1 : index
    %c0_38 = arith.constant 0 : index
    %63 = vector.load %arg9[%c0_37, %c1, %c0_38] : memref<4x8x128xf32, #tpu.memory_space<vmem>>, vector<4x1x128xf32>
    %64 = vector.shape_cast %63 : vector<4x1x128xf32> to vector<4x128xf32>
    %65 = arith.addf %64, %59 : vector<4x128xf32>
    %66 = vector.broadcast %35 : vector<1x128xf32> to vector<4x128xf32>
    %67 = arith.mulf %66, %65 : vector<4x128xf32>
    %68 = arith.addf %62, %67 : vector<4x128xf32>
    %cst_39 = arith.constant 1.000000e+00 : f32
    %69 = vector.broadcast %cst_39 : f32 to vector<4x128xf32>
    %70 = arith.cmpf ogt, %68, %69 : vector<4x128xf32>
    %71 = arith.extui %70 : vector<4x128xi1> to vector<4x128xi32>
    %72 = arith.sitofp %71 : vector<4x128xi32> to vector<4x128xf32>
    %c0_40 = arith.constant 0 : index
    %c1_41 = arith.constant 1 : index
    %c0_42 = arith.constant 0 : index
    %73 = vector.load %arg8[%c0_40, %c1_41, %c0_42] : memref<4x8x128xf32, #tpu.memory_space<vmem>>, vector<4x1x128xf32>
    %74 = vector.shape_cast %73 : vector<4x1x128xf32> to vector<4x128xf32>
    %75 = vector.shape_cast %72 : vector<4x128xf32> to vector<4x1x128xf32>
    tpu.vector_store %arg8[%c0_40, %c1_41, %c0_42], %75 {strides = array<i32>} : memref<4x8x128xf32, #tpu.memory_space<vmem>>, vector<4x1x128xf32>,
    %76 = arith.truncf %72 : vector<4x128xf32> to vector<4x128xbf16>
    %c0_43 = arith.constant 0 : index
    %c0_44 = arith.constant 0 : index
    %77 = vector.load %arg2[%c0_43, %c0_44] : memref<128x128xbf16, #tpu.memory_space<vmem>>, vector<128x128xbf16>
    %cst_45 = arith.constant dense<0.000000e+00> : vector<4x128xf32>
    %78 = tpu.matmul %76, %77, %cst_45 {dimension_numbers = #tpu.dot_dimension_numbers<[1], [0], [0], [1], [0, 0, 1, 1], [], []>} : vector<4x128xbf16>, vector<128x128xbf16>, vector<4x128xf32> -> vector<4x128xf32>
    %79 = arith.subf %68, %72 : vector<4x128xf32>
    %80 = vector.broadcast %33 : vector<1x128xf32> to vector<4x128xf32>
    %81 = arith.mulf %80, %79 : vector<4x128xf32>
    %c0_46 = arith.constant 0 : index
    %c2 = arith.constant 2 : index
    %c0_47 = arith.constant 0 : index
    %82 = vector.load %arg9[%c0_46, %c2, %c0_47] : memref<4x8x128xf32, #tpu.memory_space<vmem>>, vector<4x1x128xf32>
    %83 = vector.shape_cast %82 : vector<4x1x128xf32> to vector<4x128xf32>
    %84 = arith.addf %83, %78 : vector<4x128xf32>
    %85 = vector.broadcast %35 : vector<1x128xf32> to vector<4x128xf32>
    %86 = arith.mulf %85, %84 : vector<4x128xf32>
    %87 = arith.addf %81, %86 : vector<4x128xf32>
    %cst_48 = arith.constant 1.000000e+00 : f32
    %88 = vector.broadcast %cst_48 : f32 to vector<4x128xf32>
    %89 = arith.cmpf ogt, %87, %88 : vector<4x128xf32>
    %90 = arith.extui %89 : vector<4x128xi1> to vector<4x128xi32>
    %91 = arith.sitofp %90 : vector<4x128xi32> to vector<4x128xf32>
    %c0_49 = arith.constant 0 : index
    %c2_50 = arith.constant 2 : index
    %c0_51 = arith.constant 0 : index
    %92 = vector.load %arg8[%c0_49, %c2_50, %c0_51] : memref<4x8x128xf32, #tpu.memory_space<vmem>>, vector<4x1x128xf32>
    %93 = vector.shape_cast %92 : vector<4x1x128xf32> to vector<4x128xf32>
    %94 = vector.shape_cast %91 : vector<4x128xf32> to vector<4x1x128xf32>
    tpu.vector_store %arg8[%c0_49, %c2_50, %c0_51], %94 {strides = array<i32>} : memref<4x8x128xf32, #tpu.memory_space<vmem>>, vector<4x1x128xf32>,
    %95 = arith.truncf %91 : vector<4x128xf32> to vector<4x128xbf16>
    %c0_52 = arith.constant 0 : index
    %c0_53 = arith.constant 0 : index
    %96 = vector.load %arg2[%c0_52, %c0_53] : memref<128x128xbf16, #tpu.memory_space<vmem>>, vector<128x128xbf16>
    %cst_54 = arith.constant dense<0.000000e+00> : vector<4x128xf32>
    %97 = tpu.matmul %95, %96, %cst_54 {dimension_numbers = #tpu.dot_dimension_numbers<[1], [0], [0], [1], [0, 0, 1, 1], [], []>} : vector<4x128xbf16>, vector<128x128xbf16>, vector<4x128xf32> -> vector<4x128xf32>
    %98 = arith.subf %87, %91 : vector<4x128xf32>
    %99 = vector.broadcast %33 : vector<1x128xf32> to vector<4x128xf32>
    %100 = arith.mulf %99, %98 : vector<4x128xf32>
    %c0_55 = arith.constant 0 : index
    %c3 = arith.constant 3 : index
    %c0_56 = arith.constant 0 : index
    %101 = vector.load %arg9[%c0_55, %c3, %c0_56] : memref<4x8x128xf32, #tpu.memory_space<vmem>>, vector<4x1x128xf32>
    %102 = vector.shape_cast %101 : vector<4x1x128xf32> to vector<4x128xf32>
    %103 = arith.addf %102, %97 : vector<4x128xf32>
    %104 = vector.broadcast %35 : vector<1x128xf32> to vector<4x128xf32>
    %105 = arith.mulf %104, %103 : vector<4x128xf32>
    %106 = arith.addf %100, %105 : vector<4x128xf32>
    %cst_57 = arith.constant 1.000000e+00 : f32
    %107 = vector.broadcast %cst_57 : f32 to vector<4x128xf32>
    %108 = arith.cmpf ogt, %106, %107 : vector<4x128xf32>
    %109 = arith.extui %108 : vector<4x128xi1> to vector<4x128xi32>
    %110 = arith.sitofp %109 : vector<4x128xi32> to vector<4x128xf32>
    %c0_58 = arith.constant 0 : index
    %c3_59 = arith.constant 3 : index
    %c0_60 = arith.constant 0 : index
    %111 = vector.load %arg8[%c0_58, %c3_59, %c0_60] : memref<4x8x128xf32, #tpu.memory_space<vmem>>, vector<4x1x128xf32>
    %112 = vector.shape_cast %111 : vector<4x1x128xf32> to vector<4x128xf32>
    %113 = vector.shape_cast %110 : vector<4x128xf32> to vector<4x1x128xf32>
    tpu.vector_store %arg8[%c0_58, %c3_59, %c0_60], %113 {strides = array<i32>} : memref<4x8x128xf32, #tpu.memory_space<vmem>>, vector<4x1x128xf32>,
    %114 = arith.truncf %110 : vector<4x128xf32> to vector<4x128xbf16>
    %c0_61 = arith.constant 0 : index
    %c0_62 = arith.constant 0 : index
    %115 = vector.load %arg2[%c0_61, %c0_62] : memref<128x128xbf16, #tpu.memory_space<vmem>>, vector<128x128xbf16>
    %cst_63 = arith.constant dense<0.000000e+00> : vector<4x128xf32>
    %116 = tpu.matmul %114, %115, %cst_63 {dimension_numbers = #tpu.dot_dimension_numbers<[1], [0], [0], [1], [0, 0, 1, 1], [], []>} : vector<4x128xbf16>, vector<128x128xbf16>, vector<4x128xf32> -> vector<4x128xf32>
    %117 = arith.subf %106, %110 : vector<4x128xf32>
    %118 = vector.broadcast %33 : vector<1x128xf32> to vector<4x128xf32>
    %119 = arith.mulf %118, %117 : vector<4x128xf32>
    %c0_64 = arith.constant 0 : index
    %c4 = arith.constant 4 : index
    %c0_65 = arith.constant 0 : index
    %120 = vector.load %arg9[%c0_64, %c4, %c0_65] : memref<4x8x128xf32, #tpu.memory_space<vmem>>, vector<4x1x128xf32>
    %121 = vector.shape_cast %120 : vector<4x1x128xf32> to vector<4x128xf32>
    %122 = arith.addf %121, %116 : vector<4x128xf32>
    %123 = vector.broadcast %35 : vector<1x128xf32> to vector<4x128xf32>
    %124 = arith.mulf %123, %122 : vector<4x128xf32>
    %125 = arith.addf %119, %124 : vector<4x128xf32>
    %cst_66 = arith.constant 1.000000e+00 : f32
    %126 = vector.broadcast %cst_66 : f32 to vector<4x128xf32>
    %127 = arith.cmpf ogt, %125, %126 : vector<4x128xf32>
    %128 = arith.extui %127 : vector<4x128xi1> to vector<4x128xi32>
    %129 = arith.sitofp %128 : vector<4x128xi32> to vector<4x128xf32>
    %c0_67 = arith.constant 0 : index
    %c4_68 = arith.constant 4 : index
    %c0_69 = arith.constant 0 : index
    %130 = vector.load %arg8[%c0_67, %c4_68, %c0_69] : memref<4x8x128xf32, #tpu.memory_space<vmem>>, vector<4x1x128xf32>
    %131 = vector.shape_cast %130 : vector<4x1x128xf32> to vector<4x128xf32>
    %132 = vector.shape_cast %129 : vector<4x128xf32> to vector<4x1x128xf32>
    tpu.vector_store %arg8[%c0_67, %c4_68, %c0_69], %132 {strides = array<i32>} : memref<4x8x128xf32, #tpu.memory_space<vmem>>, vector<4x1x128xf32>,
    %133 = arith.truncf %129 : vector<4x128xf32> to vector<4x128xbf16>
    %c0_70 = arith.constant 0 : index
    %c0_71 = arith.constant 0 : index
    %134 = vector.load %arg2[%c0_70, %c0_71] : memref<128x128xbf16, #tpu.memory_space<vmem>>, vector<128x128xbf16>
    %cst_72 = arith.constant dense<0.000000e+00> : vector<4x128xf32>
    %135 = tpu.matmul %133, %134, %cst_72 {dimension_numbers = #tpu.dot_dimension_numbers<[1], [0], [0], [1], [0, 0, 1, 1], [], []>} : vector<4x128xbf16>, vector<128x128xbf16>, vector<4x128xf32> -> vector<4x128xf32>
    %136 = arith.subf %125, %129 : vector<4x128xf32>
    %137 = vector.broadcast %33 : vector<1x128xf32> to vector<4x128xf32>
    %138 = arith.mulf %137, %136 : vector<4x128xf32>
    %c0_73 = arith.constant 0 : index
    %c5 = arith.constant 5 : index
    %c0_74 = arith.constant 0 : index
    %139 = vector.load %arg9[%c0_73, %c5, %c0_74] : memref<4x8x128xf32, #tpu.memory_space<vmem>>, vector<4x1x128xf32>
    %140 = vector.shape_cast %139 : vector<4x1x128xf32> to vector<4x128xf32>
    %141 = arith.addf %140, %135 : vector<4x128xf32>
    %142 = vector.broadcast %35 : vector<1x128xf32> to vector<4x128xf32>
    %143 = arith.mulf %142, %141 : vector<4x128xf32>
    %144 = arith.addf %138, %143 : vector<4x128xf32>
    %cst_75 = arith.constant 1.000000e+00 : f32
    %145 = vector.broadcast %cst_75 : f32 to vector<4x128xf32>
    %146 = arith.cmpf ogt, %144, %145 : vector<4x128xf32>
    %147 = arith.extui %146 : vector<4x128xi1> to vector<4x128xi32>
    %148 = arith.sitofp %147 : vector<4x128xi32> to vector<4x128xf32>
    %c0_76 = arith.constant 0 : index
    %c5_77 = arith.constant 5 : index
    %c0_78 = arith.constant 0 : index
    %149 = vector.load %arg8[%c0_76, %c5_77, %c0_78] : memref<4x8x128xf32, #tpu.memory_space<vmem>>, vector<4x1x128xf32>
    %150 = vector.shape_cast %149 : vector<4x1x128xf32> to vector<4x128xf32>
    %151 = vector.shape_cast %148 : vector<4x128xf32> to vector<4x1x128xf32>
    tpu.vector_store %arg8[%c0_76, %c5_77, %c0_78], %151 {strides = array<i32>} : memref<4x8x128xf32, #tpu.memory_space<vmem>>, vector<4x1x128xf32>,
    %152 = arith.truncf %148 : vector<4x128xf32> to vector<4x128xbf16>
    %c0_79 = arith.constant 0 : index
    %c0_80 = arith.constant 0 : index
    %153 = vector.load %arg2[%c0_79, %c0_80] : memref<128x128xbf16, #tpu.memory_space<vmem>>, vector<128x128xbf16>
    %cst_81 = arith.constant dense<0.000000e+00> : vector<4x128xf32>
    %154 = tpu.matmul %152, %153, %cst_81 {dimension_numbers = #tpu.dot_dimension_numbers<[1], [0], [0], [1], [0, 0, 1, 1], [], []>} : vector<4x128xbf16>, vector<128x128xbf16>, vector<4x128xf32> -> vector<4x128xf32>
    %155 = arith.subf %144, %148 : vector<4x128xf32>
    %156 = vector.broadcast %33 : vector<1x128xf32> to vector<4x128xf32>
    %157 = arith.mulf %156, %155 : vector<4x128xf32>
    %c0_82 = arith.constant 0 : index
    %c6 = arith.constant 6 : index
    %c0_83 = arith.constant 0 : index
    %158 = vector.load %arg9[%c0_82, %c6, %c0_83] : memref<4x8x128xf32, #tpu.memory_space<vmem>>, vector<4x1x128xf32>
    %159 = vector.shape_cast %158 : vector<4x1x128xf32> to vector<4x128xf32>
    %160 = arith.addf %159, %154 : vector<4x128xf32>
    %161 = vector.broadcast %35 : vector<1x128xf32> to vector<4x128xf32>
    %162 = arith.mulf %161, %160 : vector<4x128xf32>
    %163 = arith.addf %157, %162 : vector<4x128xf32>
    %cst_84 = arith.constant 1.000000e+00 : f32
    %164 = vector.broadcast %cst_84 : f32 to vector<4x128xf32>
    %165 = arith.cmpf ogt, %163, %164 : vector<4x128xf32>
    %166 = arith.extui %165 : vector<4x128xi1> to vector<4x128xi32>
    %167 = arith.sitofp %166 : vector<4x128xi32> to vector<4x128xf32>
    %c0_85 = arith.constant 0 : index
    %c6_86 = arith.constant 6 : index
    %c0_87 = arith.constant 0 : index
    %168 = vector.load %arg8[%c0_85, %c6_86, %c0_87] : memref<4x8x128xf32, #tpu.memory_space<vmem>>, vector<4x1x128xf32>
    %169 = vector.shape_cast %168 : vector<4x1x128xf32> to vector<4x128xf32>
    %170 = vector.shape_cast %167 : vector<4x128xf32> to vector<4x1x128xf32>
    tpu.vector_store %arg8[%c0_85, %c6_86, %c0_87], %170 {strides = array<i32>} : memref<4x8x128xf32, #tpu.memory_space<vmem>>, vector<4x1x128xf32>,
    %171 = arith.truncf %167 : vector<4x128xf32> to vector<4x128xbf16>
    %c0_88 = arith.constant 0 : index
    %c0_89 = arith.constant 0 : index
    %172 = vector.load %arg2[%c0_88, %c0_89] : memref<128x128xbf16, #tpu.memory_space<vmem>>, vector<128x128xbf16>
    %cst_90 = arith.constant dense<0.000000e+00> : vector<4x128xf32>
    %173 = tpu.matmul %171, %172, %cst_90 {dimension_numbers = #tpu.dot_dimension_numbers<[1], [0], [0], [1], [0, 0, 1, 1], [], []>} : vector<4x128xbf16>, vector<128x128xbf16>, vector<4x128xf32> -> vector<4x128xf32>
    %174 = arith.subf %163, %167 : vector<4x128xf32>
    %175 = vector.broadcast %33 : vector<1x128xf32> to vector<4x128xf32>
    %176 = arith.mulf %175, %174 : vector<4x128xf32>
    %c0_91 = arith.constant 0 : index
    %c7 = arith.constant 7 : index
    %c0_92 = arith.constant 0 : index
    %177 = vector.load %arg9[%c0_91, %c7, %c0_92] : memref<4x8x128xf32, #tpu.memory_space<vmem>>, vector<4x1x128xf32>
    %178 = vector.shape_cast %177 : vector<4x1x128xf32> to vector<4x128xf32>
    %179 = arith.addf %178, %173 : vector<4x128xf32>
    %180 = vector.broadcast %35 : vector<1x128xf32> to vector<4x128xf32>
    %181 = arith.mulf %180, %179 : vector<4x128xf32>
    %182 = arith.addf %176, %181 : vector<4x128xf32>
    %cst_93 = arith.constant 1.000000e+00 : f32
    %183 = vector.broadcast %cst_93 : f32 to vector<4x128xf32>
    %184 = arith.cmpf ogt, %182, %183 : vector<4x128xf32>
    %185 = arith.extui %184 : vector<4x128xi1> to vector<4x128xi32>
    %186 = arith.sitofp %185 : vector<4x128xi32> to vector<4x128xf32>
    %c0_94 = arith.constant 0 : index
    %c7_95 = arith.constant 7 : index
    %c0_96 = arith.constant 0 : index
    %187 = vector.load %arg8[%c0_94, %c7_95, %c0_96] : memref<4x8x128xf32, #tpu.memory_space<vmem>>, vector<4x1x128xf32>
    %188 = vector.shape_cast %187 : vector<4x1x128xf32> to vector<4x128xf32>
    %189 = vector.shape_cast %186 : vector<4x128xf32> to vector<4x1x128xf32>
    tpu.vector_store %arg8[%c0_94, %c7_95, %c0_96], %189 {strides = array<i32>} : memref<4x8x128xf32, #tpu.memory_space<vmem>>, vector<4x1x128xf32>,
    return
  }
}

</mosaic_0001>

<bundles_post_ra>
// kernel: rlif_forward.1
= control target key start
LH: loop header
LB: loop body
LE: loop exit
PB: predicated region body
PF: predicated region fallthrough
CT: control target
= control target key end

     0   :  { %v2115_v2 = vmov 0.0   ;;  %vm2116_vm0 = vmmov 0   ;;  %s2599_s0 = inlined_call_operand.vmem [shape: bf16[32,128], index: 0, kind: input, shape index: {}]   ;;  %s2600_s1 = inlined_call_operand.vmem [shape: bf16[128,128], index: 1, kind: input, shape index: {}]   ;;  %s2601_s2 = inlined_call_operand.vmem [shape: bf16[128,128], index: 2, kind: input, shape index: {}]   ;;  %s2602_s3 = inlined_call_operand.vmem [shape: f32[1,128], index: 3, kind: input, shape index: {}]   ;;  %s2603_s4 = inlined_call_operand.vmem [shape: f32[1,128], index: 4, kind: input, shape index: {}]   ;;  %s2604_s5 = inlined_call_operand.vmem [shape: f32[1,128], index: 5, kind: input, shape index: {}]   ;;  %s2605_s6 = inlined_call_operand.vmem [shape: f32[4,128], index: 6, kind: input, shape index: {}]   ;;  %s2606_s7 = inlined_call_operand.vmem [shape: f32[4,128], index: 7, kind: input, shape index: {}]   ;;  %s2607_s8 = inlined_call_operand.hbm [shape: f32[4,8,128], index: 8, kind: output, shape index: {}]  }
   0x1   :  { %v2017_v0 = vld [vmem:[%s2600_s1 + $0x38] sm:$0xff]   ;;  %v2018_v1 = vld [vmem:[%s2600_s1 + $0x30] sm:$0xff]   ;;  %1850 = vmatprep.subr.bf16.mxu1 %v2115_v2  ;;  %1866 = vmatprep.mubr.msk.bf16.mxu1 %vm2116_vm0, %v2115_v2  ;;  %v2019_v3 = vld [vmem:[%s2600_s1 + $0x28] sm:$0xff]  }
   0x2   :  { %1830 = vmatprep.subr.bf16.mxu0 %v2017_v0  ;;  %v2020_v4 = vld [vmem:[%s2600_s1 + $0x20] sm:$0xff]   ;;  %v2027_v6 = vld [vmem:[%s2601_s2 + $0x38] sm:$0xff]   ;;  %v2028_v8 = vld [vmem:[%s2601_s2 + $0x30] sm:$0xff]  }
   0x3   :  { %1831 = vmatpush3.bf16.msra.mxu0 %v2017_v0  ;;  %v2025_v5 = vld [vmem:[%s2599_s0] sm:$0xff]   ;;  %v2021_v7 = vld [vmem:[%s2600_s1 + $0x18] sm:$0xff]   ;;  %1851 = vmatpush3.bf16.msra.mxu1 %v2027_v6  ;;  %v2022_v9 = vld [vmem:[%s2600_s1 + $0x10] sm:$0xff]  }
   0x4   :  { %1832 = vmatprep.subr.bf16.mxu0 %v2018_v1  ;;  %1846 = vmatprep.mubr.bf16.mxu0 %v2025_v5  ;;  %v2029_v10 = vld [vmem:[%s2601_s2 + $0x28] sm:$0xff]   ;;  %v2030_v12 = vld [vmem:[%s2601_s2 + $0x20] sm:$0xff]   ;;  %v2031_v14 = vld [vmem:[%s2601_s2 + $0x18] sm:$0xff]  }
   0x5   :  { %1852 = vmatprep.subr.bf16.mxu1 %v2115_v2  ;;  %v2023_v11 = vld [vmem:[%s2600_s1 + $0x8] sm:$0xff]   ;;  %v2024_v13 = vld [vmem:[%s2600_s1] sm:$0xff]   ;;  %v2032_v15 = vld [vmem:[%s2601_s2 + $0x10] sm:$0xff]  }
   0x6   :  { %v2026_v16 = vld [vmem:[%s2599_s0 + $0x8] sm:$0xff]   ;;  %v2034_v18 = vld [vmem:[%s2601_s2] sm:$0xff]  }
   0x7   :  { %1833 = vmatpush3.bf16.msra.mxu0 %v2018_v1  ;;  %1853 = vmatpush3.bf16.msra.mxu1 %v2028_v8  ;;  %v2033_v17 = vld [vmem:[%s2601_s2 + $0x8] sm:$0xff]   ;;  %v2234_v19 = vld [vmem:[%s2606_s7] sm:$0xf] }
   0x8   :  { %1834 = vmatprep.subr.bf16.mxu0 %v2019_v3  ;;  %1854 = vmatprep.subr.bf16.mxu1 %v2115_v2  ;;  %v227_v20 = vpack.c.bf16 %v2234_v19, %v2234_v19 }
   0xb   :  { %1835 = vmatpush3.bf16.msra.mxu0 %v2019_v3  ;;  %1855 = vmatpush3.bf16.msra.mxu1 %v2029_v10 }
   0xc   :  { %1836 = vmatprep.subr.bf16.mxu0 %v2020_v4  ;;  %1856 = vmatprep.subr.bf16.mxu1 %v2115_v2 }
   0xf   :  { %1837 = vmatpush3.bf16.msra.mxu0 %v2020_v4  ;;  %1857 = vmatpush3.bf16.msra.mxu1 %v2030_v12 }
  0x10   :  { %1838 = vmatprep.subr.bf16.mxu0 %v2021_v7  ;;  %1858 = vmatprep.subr.bf16.mxu1 %v2115_v2 }
  0x13   :  { %1839 = vmatpush3.bf16.msra.mxu0 %v2021_v7  ;;  %1859 = vmatpush3.bf16.msra.mxu1 %v2031_v14 }
  0x14   :  { %1840 = vmatprep.subr.bf16.mxu0 %v2022_v9  ;;  %1860 = vmatprep.subr.bf16.mxu1 %v2115_v2 }
  0x17   :  { %1841 = vmatpush3.bf16.msra.mxu0 %v2022_v9  ;;  %1861 = vmatpush3.bf16.msra.mxu1 %v2032_v15 }
  0x18   :  { %1842 = vmatprep.subr.bf16.mxu0 %v2023_v11  ;;  %1862 = vmatprep.subr.bf16.mxu1 %v2115_v2 }
  0x1b   :  { %1843 = vmatpush3.bf16.msra.mxu0 %v2023_v11  ;;  %1863 = vmatpush3.bf16.msra.mxu1 %v2033_v17 }
  0x1c   :  { %1844 = vmatprep.subr.bf16.mxu0 %v2024_v13  ;;  %1864 = vmatprep.subr.bf16.mxu1 %v2115_v2 }
  0x1f   :  { %1845 = vmatpush3.bf16.msra.mxu0 %v2024_v13  ;;  %1865 = vmatpush3.bf16.msra.mxu1 %v2034_v18 }
  0x20   :  { %1870 = vmatprep.subr.bf16.mxu0 %v2115_v2  ;;  %1890 = vmatprep.subr.bf16.mxu1 %v2115_v2 }
  0x22   :  { %1847 = vmatmul.mubr.bf16.vlgmr.msra.gmra.mxu0 %v2026_v16  ;;  %1867 = vmatmul.mubr.bf16.vlgmr.msra.gmra.mxu1 %v227_v20 }
  0x23   :  { %1886 = vmatprep.mubr.msk.bf16.mxu0 %vm2116_vm0, %v2115_v2  ;;  %1906 = vmatprep.mubr.msk.bf16.mxu1 %vm2116_vm0, %v2115_v2 }
  0x24   :  { %13 = vsyncpa [#allocation4], 0  ;;  %v2035_v21 = vld [vmem:[%s2601_s2 + $0x38] sm:$0xff]   ;;  %v2036_v22 = vld [vmem:[%s2601_s2 + $0x30] sm:$0xff]   ;;  %vm367_vm1 = vcmask 1041409   ;;  %vm370_vm2 = vcmask 1042434  }
  0x25   :  { %1871 = vmatpush3.bf16.msra.mxu0 %v2035_v21  ;;  %v2037_v23 = vld [vmem:[%s2601_s2 + $0x28] sm:$0xff]   ;;  %v2038_v24 = vld [vmem:[%s2601_s2 + $0x20] sm:$0xff]   ;;  %v2039_v25 = vld [vmem:[%s2601_s2 + $0x18] sm:$0xff]   ;;  %v334_v21 = vlaneseq  ;;  %vm373_vm3 = vcmask 1043459  }
  0x26   :  { %1872 = vmatprep.subr.bf16.mxu0 %v2115_v2  ;;  %v2040_v26 = vld [vmem:[%s2601_s2 + $0x10] sm:$0xff]   ;;  %v2041_v27 = vld [vmem:[%s2601_s2 + $0x8] sm:$0xff]   ;;  %v2042_v28 = vld [vmem:[%s2601_s2] sm:$0xff]  }
  0x27   :  { %v2043_v29 = vld [vmem:[%s2601_s2 + $0x38] sm:$0xff]   ;;  %v2044_v30 = vld [vmem:[%s2601_s2 + $0x30] sm:$0xff]   ;;  %v2045_v31 = vld [vmem:[%s2601_s2 + $0x28] sm:$0xff]  }
  0x28   :  { %1891 = vmatpush3.bf16.msra.mxu1 %v2043_v29  ;;  %v2046_v32 = vld [vmem:[%s2601_s2 + $0x20] sm:$0xff]  }
  0x29   :  { %1873 = vmatpush3.bf16.msra.mxu0 %v2036_v22  ;;  %1892 = vmatprep.subr.bf16.mxu1 %v2115_v2  ;;  %v1644_v8 = vld [vmem:[%s2603_s4] ss:$0 sm:$0xff] }
  0x2a   :  { %1874 = vmatprep.subr.bf16.mxu0 %v2115_v2  ;;  %v221_v9 = vld [vmem:[%s2602_s3] sm:$0x1] }
  0x2b   :  { %v1645_v14 = vld [vmem:[%s2604_s5] ss:$0 sm:$0xff]  ;;  %v222_v20 = vmax.f32 %v221_v9, 0.8187308  ;;  %v2053_v9 = vld [vmem:[%s2601_s2 + $0x28] sm:$0xff]  }
  0x2c   :  { %1893 = vmatpush3.bf16.msra.mxu1 %v2044_v30  ;;  %v225_v30 = vld [vmem:[%s2605_s6] sm:$0xf] }
  0x2d   :  { %1875 = vmatpush3.bf16.msra.mxu0 %v2037_v23  ;;  %1894 = vmatprep.subr.bf16.mxu1 %v2115_v2 }
  0x2e   :  { %1876 = vmatprep.subr.bf16.mxu0 %v2115_v2 }
  0x30   :  { %1895 = vmatpush3.bf16.msra.mxu1 %v2045_v31 }
  0x31   :  { %1877 = vmatpush3.bf16.msra.mxu0 %v2038_v24  ;;  %1896 = vmatprep.subr.bf16.mxu1 %v2115_v2 }
  0x32   :  { %1878 = vmatprep.subr.bf16.mxu0 %v2115_v2 }
  0x34   :  { %1897 = vmatpush3.bf16.msra.mxu1 %v2046_v32 }
  0x35   :  { %1879 = vmatpush3.bf16.msra.mxu0 %v2039_v25  ;;  %1898 = vmatprep.subr.bf16.mxu1 %v2115_v2 }
  0x36   :  { %1880 = vmatprep.subr.bf16.mxu0 %v2115_v2 }
  0x39   :  { %1881 = vmatpush3.bf16.msra.mxu0 %v2040_v26  ;;  %v335_v26 = vshrl.u32 %v334_v21, 7 }
  0x3a   :  { %1882 = vmatprep.subr.bf16.mxu0 %v2115_v2 }
  0x3b   :  { %v336_v31 = vsub.s32 0, %v335_v26 }
  0x3d   :  { %1883 = vmatpush3.bf16.msra.mxu0 %v2041_v27  ;;  %v223_v27 = vmin.f32 %v222_v20, 0.96078944 }
  0x3e   :  { %1884 = vmatprep.subr.bf16.mxu0 %v2115_v2 }
  0x41   :  { %1885 = vmatpush3.bf16.msra.mxu0 %v2042_v28 }
  0x42   :  { %1910 = vmatprep.subr.bf16.mxu0 %v2115_v2 }
  0xe2   :  { %v1848_v33 = vpop.f32.mrf.mxu0  ;;  %v2292_v39 = vpop.f32.mrf.mxu1 }
  0xe3   :  { %v345_v28 = vrot.slane %v2292_v39, 1  ;;  %v346_v29 = vrot.slane %v2292_v39, 2  ;;  %v347_v32 = vrot.slane %v2292_v39, 3 }
  0xe4   :  { %v145_v34 = vpop.f32.mrf.mxu0  ;;  %v1868_v41 = vpop.f32.mrf.mxu1 }
  0xe6   :  { %v1849_v35 = vpop.f32.mrf.mxu0  ;;  %v329_v43 = vpop.f32.mrf.mxu1 }
  0xe7   :  { %v2117_v43 = vmov 1966171168  }
  0xe8   :  { %v148_v36 = vpop.f32.mrf.mxu0  ;;  %v1869_v45 = vpop.f32.mrf.mxu1 }
  0xe9   :  { %v160_v37 = vadd.f32 %v148_v36, %v145_v34 }
  0xeb   :  { %v161_v38 = vadd.f32 %v1848_v33, %v160_v37  ;;  %v332_v37 = vsub.f32 %v225_v30, %v2234_v19 }
  0xed   :  { %v162_v40 = vadd.f32 %v1849_v35, %v161_v38 }
  0xef   :  { %v163_v42 = vrot.slane %v162_v40, 4 }
  0xf1   :  { %v164_v44 = vadd.f32 %v163_v42, %v162_v40  ;;  %v2310_v42 = vrot.slane %v223_v27, %v336_v31 }
  0xf3   :  { %v165_v46 = vrot.slane %v164_v44, 2 }
  0xf5   :  { %v166_v47 = vadd.f32 %v165_v46, %v164_v44  ;;  %v383_v44 = vunpack.c.l.s4 %v2117_v43 }
  0xf7   :  { %v167_v48 = vrot.slane %v166_v47, 1 }
  0xf9   :  { %v168_v49 = vadd.f32 %v167_v48, %v166_v47 }
  0xfb   :  { %v170_v50 = vmul.f32 0.03125, %v168_v49 }
  0xfd   :  { %v171_v51 = vsub.f32 %v145_v34, %v170_v50  ;;  %v172_v52 = vsub.f32 %v148_v36, %v170_v50  ;;  %v173_v53 = vsub.f32 %v1848_v33, %v170_v50  ;;  %v174_v54 = vsub.f32 %v1849_v35, %v170_v50 }
  0xfe   :  { %v224_v33 = vsub.f32 1.0, %v223_v27 }
  0xff   :  { %v175_v55 = vmul.f32 %v171_v51, %v171_v51  ;;  %v176_v56 = vmul.f32 %v172_v52, %v172_v52  ;;  %v177_v57 = vmul.f32 %v173_v53, %v173_v53  ;;  %v178_v59 = vmul.f32 %v174_v54, %v174_v54 }
 0x100   :  { %v2313_v49 = vrot.slane %v224_v33, %v336_v31 }
 0x101   :  { %v179_v58 = vadd.f32 %v176_v56, %v175_v55 }
 0x103   :  { %v180_v60 = vadd.f32 %v179_v58, %v177_v57 }
 0x105   :  { %v181_v61 = vadd.f32 %v180_v60, %v178_v59  ;;  %v2118_v59 = vmov 1.0|1.0  }
 0x107   :  { %v182_v62 = vrot.slane %v181_v61, 4 }
 0x109   :  { %v183_v63 = vadd.f32 %v182_v62, %v181_v61 }
 0x10b   :  { %v184_v0 = vrot.slane %v183_v63, 2 }
 0x10d   :  { %v185_v1 = vadd.f32 %v184_v0, %v183_v63 }
 0x10f   :  { %v186_v3 = vrot.slane %v185_v1, 1 }
 0x111   :  { %v187_v4 = vadd.f32 %v186_v3, %v185_v1  ;;  %v2047_v3 = vld [vmem:[%s2601_s2 + $0x18] sm:$0xff]  }
 0x112   :  { %1899 = vmatpush3.bf16.msra.mxu1 %v2047_v3 }
 0x113   :  { %v188_v5 = vmul.f32 0.03125, %v187_v4  ;;  %1900 = vmatprep.subr.bf16.mxu1 %v2115_v2  ;;  %v2048_v4 = vld [vmem:[%s2601_s2 + $0x10] sm:$0xff]  }
 0x115   :  { %v189_v6 = vadd.f32 1e-05, %v188_v5  ;;  %v2049_v5 = vld [vmem:[%s2601_s2 + $0x8] sm:$0xff]  }
 0x116   :  { %1901 = vmatpush3.bf16.msra.mxu1 %v2048_v4 }
 0x117   :  { %2091 = vrsqrt.f32 %v189_v6  ;;  %1902 = vmatprep.subr.bf16.mxu1 %v2115_v2  ;;  %v2050_v6 = vld [vmem:[%s2601_s2] sm:$0xff]  }
 0x11a   :  { %1903 = vmatpush3.bf16.msra.mxu1 %v2049_v5 }
 0x11b   :  { %1904 = vmatprep.subr.bf16.mxu1 %v2115_v2 }
 0x11e   :  { %1905 = vmatpush3.bf16.msra.mxu1 %v2050_v6 }
 0x11f   :  { %1930 = vmatprep.subr.bf16.mxu1 %v2115_v2 }
 0x124   :  { %v2092_v7 = vpop.eup %2091 }
 0x125   :  { %v191_v10 = vmul.f32 %v2092_v7, %v171_v51  ;;  %v192_v11 = vmul.f32 %v2092_v7, %v172_v52  ;;  %v193_v12 = vmul.f32 %v2092_v7, %v173_v53  ;;  %v194_v13 = vmul.f32 %v2092_v7, %v174_v54  ;;  %v2051_v7 = vld [vmem:[%s2601_s2 + $0x38] sm:$0xff]  }
 0x126   :  { %v339_v51 = vmul.f32 %v2310_v42, %v332_v37  ;;  %v384_v52 = vunpack.c.0.s8 %v383_v44 }
 0x127   :  { %v202_v15 = vmul.f32 %v1644_v8, %v191_v10  ;;  %v203_v16 = vmul.f32 %v1644_v8, %v192_v11  ;;  %v204_v17 = vmul.f32 %v1644_v8, %v193_v12  ;;  %v205_v18 = vmul.f32 %v1644_v8, %v194_v13  ;;  %v2052_v8 = vld [vmem:[%s2601_s2 + $0x30] sm:$0xff]   ;;  %v2054_v10 = vld [vmem:[%s2601_s2 + $0x20] sm:$0xff]  }
 0x128   :  { %v2320_v56 = vsub.s32 %v384_v52, %v335_v26  ;;  %v2061_v52 = vld [vmem:[%s2601_s2 + $0x28] sm:$0xff]  }
 0x129   :  { %v213_v22 = vadd.f32 %v1645_v14, %v202_v15  ;;  %v214_v23 = vadd.f32 %v1645_v14, %v203_v16  ;;  %v215_v24 = vadd.f32 %v1645_v14, %v204_v17  ;;  %v216_v25 = vadd.f32 %v1645_v14, %v205_v18 }
 0x12b   :  { %217 = vst [vmem:[#allocation2] sm:$0xff] %v213_v22  ;;  %218 = vst [vmem:[#allocation2 + $0x8] sm:$0xff] %v214_v23 }
 0x12c   :  { %219 = vst [vmem:[#allocation2 + $0x10] sm:$0xff] %v215_v24  ;;  %220 = vst [vmem:[#allocation2 + $0x18] sm:$0xff] %v216_v25 }
 0x132   :  { %v340_v34 = vld [vmem:[#allocation2] sm:$0x1]  ;;  %v341_v35 = vld [vmem:[#allocation2 + $0x8] sm:$0x1]  ;;  %v522_v15 = vld [vmem:[#allocation2 + $0x9] sm:$0x1] }
 0x133   :  { %v342_v36 = vld [vmem:[#allocation2 + $0x10] sm:$0x1]  ;;  %v343_v38 = vld [vmem:[#allocation2 + $0x18] sm:$0x1]  ;;  %v353_v40 = vadd.f32 %v345_v28, %v341_v35  ;;  %v352_v46 = vadd.f32 %v340_v34, %v2292_v39  ;;  %v523_v16 = vld [vmem:[#allocation2 + $0x11] sm:$0x1] }
 0x134   :  { %v354_v41 = vadd.f32 %v346_v29, %v342_v36  ;;  %v355_v45 = vadd.f32 %v347_v32, %v343_v38  ;;  %v524_v17 = vld [vmem:[#allocation2 + $0x19] sm:$0x1]  ;;  %v521_v23 = vld [vmem:[#allocation2 + $0x1] sm:$0x1]  ;;  %v693_v3 = vld [vmem:[#allocation2 + $0x2] sm:$0x1] }
 0x135   :  { %v366_v47 = vrot.slane %v353_v40, 7 }
 0x136   :  { %v369_v48 = vrot.slane %v354_v41, 6  ;;  %v372_v19 = vrot.slane %v355_v45, 5 }
 0x137   :  { %v368_v50 = vsel %vm367_vm1, %v366_v47, %v352_v46  ;;  %v2055_v46 = vld [vmem:[%s2601_s2 + $0x18] sm:$0xff]   ;;  %v2056_v47 = vld [vmem:[%s2601_s2 + $0x10] sm:$0xff]  }
 0x138   :  { %v371_v53 = vsel %vm370_vm2, %v369_v48, %v368_v50  ;;  %v2057_v48 = vld [vmem:[%s2601_s2 + $0x8] sm:$0xff]   ;;  %v2058_v50 = vld [vmem:[%s2601_s2] sm:$0xff]  }
 0x139   :  { %v374_v54 = vsel %vm373_vm3, %v372_v19, %v371_v53  ;;  %v2059_v19 = vld [vmem:[%s2601_s2 + $0x38] sm:$0xff]   ;;  %v2062_v53 = vld [vmem:[%s2601_s2 + $0x20] sm:$0xff]  }
 0x13a   :  { %v376_v55 = vmul.f32 %v374_v54, %v2313_v49 }
 0x13c   :  { %v2322_v39 = vadd.f32 %v376_v55, %v339_v51  ;;  %v2060_v51 = vld [vmem:[%s2601_s2 + $0x30] sm:$0xff]  }
 0x13e   :  { %vm378_vm4 = vcmp.gt.f32.partialorder %v2322_v39, 1.0 }
 0x13f   :  { %v1654_v57 = vsel %vm378_vm4, 1.0, %v2115_v2  ;;  %vm1665_vm5 = vmpackc.low %vm378_vm4, %vm378_vm4 }
 0x140   :  { %v388_v58 = vrot.slane %v1654_v57, %v2320_v56  ;;  %1887 = vmatmul.mubr.msk.bf16.vlgmr.msra.gmra.mxu0 %vm1665_vm5, %v2118_v59  ;;  %v519_v60 = vsub.f32 %v2322_v39, %v1654_v57 }
 0x141   :  { %1926 = vmatprep.mubr.msk.bf16.mxu0 %vm2116_vm0, %v2115_v2  ;;  %1911 = vmatpush3.bf16.msra.mxu0 %v2051_v7 }
 0x142   :  { %v389_v61 = vcombine.high %v388_v58, %v388_v58  ;;  %v396_v62 = vrot.slane %v388_v58, %v2320_v56  ;;  %1655 = vst.sshfl [vmem:[#allocation3] sm:$0x1 pattern:$0x73625140] %v388_v58  ;;  %1912 = vmatprep.subr.bf16.mxu0 %v2115_v2  ;;  %v520_v33 = vmul.f32 %v519_v60, %v2310_v42  ;;  %v694_v58 = vld [vmem:[#allocation2 + $0xa] sm:$0x1] }
 0x143   :  { %v695_v60 = vld [vmem:[#allocation2 + $0x12] sm:$0x1] }
 0x144   :  { %v403_v63 = vrot.slane %v389_v61, %v2320_v56  ;;  %v404_v0 = vcombine.high %v396_v62, %v396_v62  ;;  %1656 = vst.sshfl [vmem:[#allocation3 + $0x8] sm:$0x1 pattern:$0x73625140] %v389_v61  ;;  %v696_v61 = vld [vmem:[#allocation2 + $0x1a] sm:$0x1] }
 0x145   :  { %1913 = vmatpush3.bf16.msra.mxu0 %v2052_v8 }
 0x146   :  { %v405_v1 = vcombine.high %v403_v63, %v403_v63  ;;  %412 = vst [vmem:[#allocation3 + $0x10] sm:$0x1] %v404_v0  ;;  %1914 = vmatprep.subr.bf16.mxu0 %v2115_v2 }
 0x148   :  { %413 = vst [vmem:[#allocation3 + $0x18] sm:$0x1] %v405_v1 }
 0x149   :  { %1915 = vmatpush3.bf16.msra.mxu0 %v2053_v9 }
 0x14a   :  { %1916 = vmatprep.subr.bf16.mxu0 %v2115_v2 }
 0x14d   :  { %1917 = vmatpush3.bf16.msra.mxu0 %v2054_v10 }
 0x14e   :  { %1918 = vmatprep.subr.bf16.mxu0 %v2115_v2 }
 0x151   :  { %1919 = vmatpush3.bf16.msra.mxu0 %v2055_v46  ;;  %v865_v46 = vld [vmem:[#allocation2 + $0x3] sm:$0x1] }
 0x152   :  { %1920 = vmatprep.subr.bf16.mxu0 %v2115_v2 }
 0x155   :  { %1921 = vmatpush3.bf16.msra.mxu0 %v2056_v47 }
 0x156   :  { %1922 = vmatprep.subr.bf16.mxu0 %v2115_v2 }
 0x159   :  { %1923 = vmatpush3.bf16.msra.mxu0 %v2057_v48 }
 0x15a   :  { %1924 = vmatprep.subr.bf16.mxu0 %v2115_v2 }
 0x15d   :  { %1925 = vmatpush3.bf16.msra.mxu0 %v2058_v50 }
 0x15e   :  { %1950 = vmatprep.subr.bf16.mxu0 %v2115_v2 }
 0x200   :  { %v513_v11 = vpop.f32.mrf.mxu0 }
 0x201   :  { %v526_v12 = vrot.slane %v513_v11, 1  ;;  %v527_v13 = vrot.slane %v513_v11, 2  ;;  %v528_v14 = vrot.slane %v513_v11, 3  ;;  %v533_v25 = vadd.f32 %v521_v23, %v513_v11 }
 0x202   :  { %v1888_v18 = vpop.f32.mrf.mxu0 }
 0x203   :  { %v534_v20 = vadd.f32 %v526_v12, %v522_v15  ;;  %v535_v21 = vadd.f32 %v527_v13, %v523_v16  ;;  %v536_v22 = vadd.f32 %v528_v14, %v524_v17 }
 0x204   :  { %v516_v24 = vpop.f32.mrf.mxu0 }
 0x205   :  { %v541_v26 = vrot.slane %v534_v20, 7  ;;  %v543_v27 = vrot.slane %v535_v21, 6  ;;  %v545_v30 = vrot.slane %v536_v22, 5 }
 0x206   :  { %v1889_v28 = vpop.f32.mrf.mxu0 }
 0x207   :  { %v542_v29 = vsel %vm367_vm1, %v541_v26, %v533_v25  ;;  %v2063_v25 = vld [vmem:[%s2601_s2 + $0x18] sm:$0xff]   ;;  %v2064_v26 = vld [vmem:[%s2601_s2 + $0x10] sm:$0xff]   ;;  %v2066_v28 = vld [vmem:[%s2601_s2] sm:$0xff]  }
 0x208   :  { %v544_v31 = vsel %vm370_vm2, %v543_v27, %v542_v29  ;;  %v2065_v27 = vld [vmem:[%s2601_s2 + $0x8] sm:$0xff]   ;;  %v2067_v29 = vld [vmem:[%s2601_s2 + $0x38] sm:$0xff]  }
 0x209   :  { %v546_v32 = vsel %vm373_vm3, %v545_v30, %v544_v31  ;;  %v2068_v30 = vld [vmem:[%s2601_s2 + $0x30] sm:$0xff]   ;;  %v2069_v31 = vld [vmem:[%s2601_s2 + $0x28] sm:$0xff]  }
 0x20a   :  { %v548_v34 = vmul.f32 %v546_v32, %v2313_v49  ;;  %v2070_v32 = vld [vmem:[%s2601_s2 + $0x20] sm:$0xff]  }
 0x20c   :  { %v2370_v35 = vadd.f32 %v548_v34, %v520_v33 }
 0x20e   :  { %vm550_vm6 = vcmp.gt.f32.partialorder %v2370_v35, 1.0 }
 0x20f   :  { %v1667_v36 = vsel %vm550_vm6, 1.0, %v2115_v2  ;;  %vm1678_vm7 = vmpackc.low %vm550_vm6, %vm550_vm6 }
 0x210   :  { %v560_v37 = vrot.slane %v1667_v36, %v2320_v56  ;;  %1907 = vmatmul.mubr.msk.bf16.vlgmr.msra.gmra.mxu1 %vm1678_vm7, %v2118_v59  ;;  %v691_v38 = vsub.f32 %v2370_v35, %v1667_v36 }
 0x211   :  { %1946 = vmatprep.mubr.msk.bf16.mxu1 %vm2116_vm0, %v2115_v2  ;;  %1931 = vmatpush3.bf16.msra.mxu1 %v2059_v19 }
 0x212   :  { %v561_v40 = vcombine.high %v560_v37, %v560_v37  ;;  %v568_v41 = vrot.slane %v560_v37, %v2320_v56  ;;  %1668 = vst.sshfl [vmem:[#allocation3 + $0x1] sm:$0x1 pattern:$0x73625140] %v560_v37  ;;  %1932 = vmatprep.subr.bf16.mxu1 %v2115_v2  ;;  %v692_v13 = vmul.f32 %v691_v38, %v2310_v42  ;;  %v866_v37 = vld [vmem:[#allocation2 + $0xb] sm:$0x1] }
 0x213   :  { %v867_v38 = vld [vmem:[#allocation2 + $0x13] sm:$0x1] }
 0x214   :  { %v575_v43 = vrot.slane %v561_v40, %v2320_v56  ;;  %v576_v44 = vcombine.high %v568_v41, %v568_v41  ;;  %1669 = vst.sshfl [vmem:[#allocation3 + $0x9] sm:$0x1 pattern:$0x73625140] %v561_v40  ;;  %v868_v40 = vld [vmem:[#allocation2 + $0x1b] sm:$0x1] }
 0x215   :  { %1933 = vmatpush3.bf16.msra.mxu1 %v2060_v51 }
 0x216   :  { %v577_v45 = vcombine.high %v575_v43, %v575_v43  ;;  %584 = vst [vmem:[#allocation3 + $0x11] sm:$0x1] %v576_v44  ;;  %1934 = vmatprep.subr.bf16.mxu1 %v2115_v2 }
 0x218   :  { %585 = vst [vmem:[#allocation3 + $0x19] sm:$0x1] %v577_v45 }
 0x219   :  { %1935 = vmatpush3.bf16.msra.mxu1 %v2061_v52 }
 0x21a   :  { %1936 = vmatprep.subr.bf16.mxu1 %v2115_v2 }
 0x21d   :  { %1937 = vmatpush3.bf16.msra.mxu1 %v2062_v53 }
 0x21e   :  { %1938 = vmatprep.subr.bf16.mxu1 %v2115_v2 }
 0x221   :  { %1939 = vmatpush3.bf16.msra.mxu1 %v2063_v25  ;;  %v1037_v25 = vld [vmem:[#allocation2 + $0x4] sm:$0x1] }
 0x222   :  { %1940 = vmatprep.subr.bf16.mxu1 %v2115_v2 }
 0x225   :  { %1941 = vmatpush3.bf16.msra.mxu1 %v2064_v26 }
 0x226   :  { %1942 = vmatprep.subr.bf16.mxu1 %v2115_v2 }
 0x229   :  { %1943 = vmatpush3.bf16.msra.mxu1 %v2065_v27 }
 0x22a   :  { %1944 = vmatprep.subr.bf16.mxu1 %v2115_v2 }
 0x22d   :  { %1945 = vmatpush3.bf16.msra.mxu1 %v2066_v28 }
 0x22e   :  { %1970 = vmatprep.subr.bf16.mxu1 %v2115_v2 }
 0x2d0   :  { %v685_v54 = vpop.f32.mrf.mxu1 }
 0x2d1   :  { %v698_v55 = vrot.slane %v685_v54, 1  ;;  %v699_v39 = vrot.slane %v685_v54, 2  ;;  %v700_v57 = vrot.slane %v685_v54, 3  ;;  %v705_v5 = vadd.f32 %v693_v3, %v685_v54 }
 0x2d2   :  { %v1908_v62 = vpop.f32.mrf.mxu1 }
 0x2d3   :  { %v706_v63 = vadd.f32 %v698_v55, %v694_v58  ;;  %v707_v0 = vadd.f32 %v699_v39, %v695_v60  ;;  %v708_v1 = vadd.f32 %v700_v57, %v696_v61 }
 0x2d4   :  { %v688_v4 = vpop.f32.mrf.mxu1 }
 0x2d5   :  { %v713_v6 = vrot.slane %v706_v63, 7  ;;  %v715_v7 = vrot.slane %v707_v0, 6  ;;  %v717_v10 = vrot.slane %v708_v1, 5 }
 0x2d6   :  { %v1909_v8 = vpop.f32.mrf.mxu1 }
 0x2d7   :  { %v714_v9 = vsel %vm367_vm1, %v713_v6, %v705_v5  ;;  %v2071_v5 = vld [vmem:[%s2601_s2 + $0x18] sm:$0xff]   ;;  %v2072_v6 = vld [vmem:[%s2601_s2 + $0x10] sm:$0xff]   ;;  %v2074_v8 = vld [vmem:[%s2601_s2] sm:$0xff]  }
 0x2d8   :  { %v716_v11 = vsel %vm370_vm2, %v715_v7, %v714_v9  ;;  %v2073_v7 = vld [vmem:[%s2601_s2 + $0x8] sm:$0xff]   ;;  %v2075_v9 = vld [vmem:[%s2601_s2 + $0x38] sm:$0xff]  }
 0x2d9   :  { %v718_v12 = vsel %vm373_vm3, %v717_v10, %v716_v11  ;;  %v2076_v10 = vld [vmem:[%s2601_s2 + $0x30] sm:$0xff]   ;;  %v2077_v11 = vld [vmem:[%s2601_s2 + $0x28] sm:$0xff]  }
 0x2da   :  { %v720_v14 = vmul.f32 %v718_v12, %v2313_v49  ;;  %v2078_v12 = vld [vmem:[%s2601_s2 + $0x20] sm:$0xff]  }
 0x2dc   :  { %v2418_v15 = vadd.f32 %v720_v14, %v692_v13 }
 0x2de   :  { %vm722_vm8 = vcmp.gt.f32.partialorder %v2418_v15, 1.0 }
 0x2df   :  { %v1680_v16 = vsel %vm722_vm8, 1.0, %v2115_v2  ;;  %vm1691_vm9 = vmpackc.low %vm722_vm8, %vm722_vm8 }
 0x2e0   :  { %v732_v17 = vrot.slane %v1680_v16, %v2320_v56  ;;  %1927 = vmatmul.mubr.msk.bf16.vlgmr.msra.gmra.mxu0 %vm1691_vm9, %v2118_v59  ;;  %v863_v18 = vsub.f32 %v2418_v15, %v1680_v16 }
 0x2e1   :  { %1966 = vmatprep.mubr.msk.bf16.mxu0 %vm2116_vm0, %v2115_v2  ;;  %1951 = vmatpush3.bf16.msra.mxu0 %v2067_v29 }
 0x2e2   :  { %v733_v20 = vcombine.high %v732_v17, %v732_v17  ;;  %v740_v21 = vrot.slane %v732_v17, %v2320_v56  ;;  %1681 = vst.sshfl [vmem:[#allocation3 + $0x2] sm:$0x1 pattern:$0x73625140] %v732_v17  ;;  %1952 = vmatprep.subr.bf16.mxu0 %v2115_v2  ;;  %v864_v39 = vmul.f32 %v863_v18, %v2310_v42  ;;  %v1038_v17 = vld [vmem:[#allocation2 + $0xc] sm:$0x1] }
 0x2e3   :  { %v1039_v18 = vld [vmem:[#allocation2 + $0x14] sm:$0x1] }
 0x2e4   :  { %v747_v22 = vrot.slane %v733_v20, %v2320_v56  ;;  %v748_v23 = vcombine.high %v740_v21, %v740_v21  ;;  %1682 = vst.sshfl [vmem:[#allocation3 + $0xa] sm:$0x1 pattern:$0x73625140] %v733_v20  ;;  %v1040_v20 = vld [vmem:[#allocation2 + $0x1c] sm:$0x1] }
 0x2e5   :  { %1953 = vmatpush3.bf16.msra.mxu0 %v2068_v30 }
 0x2e6   :  { %v749_v24 = vcombine.high %v747_v22, %v747_v22  ;;  %756 = vst [vmem:[#allocation3 + $0x12] sm:$0x1] %v748_v23  ;;  %1954 = vmatprep.subr.bf16.mxu0 %v2115_v2 }
 0x2e8   :  { %757 = vst [vmem:[#allocation3 + $0x1a] sm:$0x1] %v749_v24 }
 0x2e9   :  { %1955 = vmatpush3.bf16.msra.mxu0 %v2069_v31 }
 0x2ea   :  { %1956 = vmatprep.subr.bf16.mxu0 %v2115_v2 }
 0x2ed   :  { %1957 = vmatpush3.bf16.msra.mxu0 %v2070_v32 }
 0x2ee   :  { %1958 = vmatprep.subr.bf16.mxu0 %v2115_v2 }
 0x2f1   :  { %1959 = vmatpush3.bf16.msra.mxu0 %v2071_v5  ;;  %v1209_v5 = vld [vmem:[#allocation2 + $0x5] sm:$0x1] }
 0x2f2   :  { %1960 = vmatprep.subr.bf16.mxu0 %v2115_v2 }
 0x2f5   :  { %1961 = vmatpush3.bf16.msra.mxu0 %v2072_v6 }
 0x2f6   :  { %1962 = vmatprep.subr.bf16.mxu0 %v2115_v2 }
 0x2f9   :  { %1963 = vmatpush3.bf16.msra.mxu0 %v2073_v7 }
 0x2fa   :  { %1964 = vmatprep.subr.bf16.mxu0 %v2115_v2 }
 0x2fd   :  { %1965 = vmatpush3.bf16.msra.mxu0 %v2074_v8 }
 0x2fe   :  { %1990 = vmatprep.subr.bf16.mxu0 %v2115_v2 }
 0x3a0   :  { %v857_v33 = vpop.f32.mrf.mxu0 }
 0x3a1   :  { %v870_v34 = vrot.slane %v857_v33, 1  ;;  %v871_v35 = vrot.slane %v857_v33, 2  ;;  %v872_v36 = vrot.slane %v857_v33, 3  ;;  %v877_v48 = vadd.f32 %v865_v46, %v857_v33 }
 0x3a2   :  { %v1928_v41 = vpop.f32.mrf.mxu0 }
 0x3a3   :  { %v878_v43 = vadd.f32 %v870_v34, %v866_v37  ;;  %v879_v44 = vadd.f32 %v871_v35, %v867_v38  ;;  %v880_v45 = vadd.f32 %v872_v36, %v868_v40 }
 0x3a4   :  { %v860_v47 = vpop.f32.mrf.mxu0 }
 0x3a5   :  { %v885_v50 = vrot.slane %v878_v43, 7  ;;  %v887_v19 = vrot.slane %v879_v44, 6  ;;  %v889_v53 = vrot.slane %v880_v45, 5 }
 0x3a6   :  { %v1929_v51 = vpop.f32.mrf.mxu0 }
 0x3a7   :  { %v886_v52 = vsel %vm367_vm1, %v885_v50, %v877_v48  ;;  %v2079_v48 = vld [vmem:[%s2601_s2 + $0x18] sm:$0xff]   ;;  %v2080_v50 = vld [vmem:[%s2601_s2 + $0x10] sm:$0xff]   ;;  %v2082_v51 = vld [vmem:[%s2601_s2] sm:$0xff]  }
 0x3a8   :  { %v888_v54 = vsel %vm370_vm2, %v887_v19, %v886_v52  ;;  %v2081_v19 = vld [vmem:[%s2601_s2 + $0x8] sm:$0xff]   ;;  %v2083_v52 = vld [vmem:[%s2601_s2 + $0x38] sm:$0xff]  }
 0x3a9   :  { %v890_v55 = vsel %vm373_vm3, %v889_v53, %v888_v54  ;;  %v2084_v53 = vld [vmem:[%s2601_s2 + $0x30] sm:$0xff]   ;;  %v2085_v54 = vld [vmem:[%s2601_s2 + $0x28] sm:$0xff]  }
 0x3aa   :  { %v892_v57 = vmul.f32 %v890_v55, %v2313_v49  ;;  %v2086_v55 = vld [vmem:[%s2601_s2 + $0x20] sm:$0xff]  }
 0x3ac   :  { %v2466_v58 = vadd.f32 %v892_v57, %v864_v39 }
 0x3ae   :  { %vm894_vm10 = vcmp.gt.f32.partialorder %v2466_v58, 1.0 }
 0x3af   :  { %v1693_v60 = vsel %vm894_vm10, 1.0, %v2115_v2  ;;  %vm1704_vm11 = vmpackc.low %vm894_vm10, %vm894_vm10 }
 0x3b0   :  { %v904_v61 = vrot.slane %v1693_v60, %v2320_v56  ;;  %1947 = vmatmul.mubr.msk.bf16.vlgmr.msra.gmra.mxu1 %vm1704_vm11, %v2118_v59  ;;  %v1035_v62 = vsub.f32 %v2466_v58, %v1693_v60 }
 0x3b1   :  { %1986 = vmatprep.mubr.msk.bf16.mxu1 %vm2116_vm0, %v2115_v2  ;;  %1971 = vmatpush3.bf16.msra.mxu1 %v2075_v9 }
 0x3b2   :  { %v905_v63 = vcombine.high %v904_v61, %v904_v61  ;;  %v912_v0 = vrot.slane %v904_v61, %v2320_v56  ;;  %1694 = vst.sshfl [vmem:[#allocation3 + $0x3] sm:$0x1 pattern:$0x73625140] %v904_v61  ;;  %1972 = vmatprep.subr.bf16.mxu1 %v2115_v2  ;;  %v1036_v35 = vmul.f32 %v1035_v62, %v2310_v42  ;;  %v1210_v61 = vld [vmem:[#allocation2 + $0xd] sm:$0x1] }
 0x3b3   :  { %v1211_v62 = vld [vmem:[#allocation2 + $0x15] sm:$0x1] }
 0x3b4   :  { %v919_v1 = vrot.slane %v905_v63, %v2320_v56  ;;  %v920_v3 = vcombine.high %v912_v0, %v912_v0  ;;  %1695 = vst.sshfl [vmem:[#allocation3 + $0xb] sm:$0x1 pattern:$0x73625140] %v905_v63  ;;  %v1212_v63 = vld [vmem:[#allocation2 + $0x1d] sm:$0x1] }
 0x3b5   :  { %1973 = vmatpush3.bf16.msra.mxu1 %v2076_v10 }
 0x3b6   :  { %v921_v4 = vcombine.high %v919_v1, %v919_v1  ;;  %928 = vst [vmem:[#allocation3 + $0x13] sm:$0x1] %v920_v3  ;;  %1974 = vmatprep.subr.bf16.mxu1 %v2115_v2 }
 0x3b8   :  { %929 = vst [vmem:[#allocation3 + $0x1b] sm:$0x1] %v921_v4 }
 0x3b9   :  { %1975 = vmatpush3.bf16.msra.mxu1 %v2077_v11 }
 0x3ba   :  { %1976 = vmatprep.subr.bf16.mxu1 %v2115_v2 }
 0x3bd   :  { %1977 = vmatpush3.bf16.msra.mxu1 %v2078_v12 }
 0x3be   :  { %1978 = vmatprep.subr.bf16.mxu1 %v2115_v2 }
 0x3c1   :  { %1979 = vmatpush3.bf16.msra.mxu1 %v2079_v48 }
 0x3c2   :  { %1980 = vmatprep.subr.bf16.mxu1 %v2115_v2 }
 0x3c5   :  { %1981 = vmatpush3.bf16.msra.mxu1 %v2080_v50 }
 0x3c6   :  { %1982 = vmatprep.subr.bf16.mxu1 %v2115_v2 }
 0x3c9   :  { %1983 = vmatpush3.bf16.msra.mxu1 %v2081_v19 }
 0x3ca   :  { %1984 = vmatprep.subr.bf16.mxu1 %v2115_v2 }
 0x3cd   :  { %1985 = vmatpush3.bf16.msra.mxu1 %v2082_v51 }
 0x470   :  { %v1029_v13 = vpop.f32.mrf.mxu1 }
 0x471   :  { %v1042_v14 = vrot.slane %v1029_v13, 1  ;;  %v1043_v15 = vrot.slane %v1029_v13, 2  ;;  %v1044_v16 = vrot.slane %v1029_v13, 3  ;;  %v1049_v27 = vadd.f32 %v1037_v25, %v1029_v13 }
 0x472   :  { %v1948_v21 = vpop.f32.mrf.mxu1 }
 0x473   :  { %v1050_v22 = vadd.f32 %v1042_v14, %v1038_v17  ;;  %v1051_v23 = vadd.f32 %v1043_v15, %v1039_v18  ;;  %v1052_v24 = vadd.f32 %v1044_v16, %v1040_v20 }
 0x474   :  { %v1032_v26 = vpop.f32.mrf.mxu1 }
 0x475   :  { %v1057_v28 = vrot.slane %v1050_v22, 7  ;;  %v1059_v29 = vrot.slane %v1051_v23, 6  ;;  %v1061_v32 = vrot.slane %v1052_v24, 5 }
 0x476   :  { %v1949_v30 = vpop.f32.mrf.mxu1 }
 0x477   :  { %v1058_v31 = vsel %vm367_vm1, %v1057_v28, %v1049_v27  ;;  %v2087_v27 = vld [vmem:[%s2601_s2 + $0x18] sm:$0xff]   ;;  %v2088_v28 = vld [vmem:[%s2601_s2 + $0x10] sm:$0xff]   ;;  %v2090_v30 = vld [vmem:[%s2601_s2] sm:$0xff]  }
 0x478   :  { %v1060_v33 = vsel %vm370_vm2, %v1059_v29, %v1058_v31  ;;  %v2089_v29 = vld [vmem:[%s2601_s2 + $0x8] sm:$0xff]   ;;  %s2119_s2 = smov [#allocation3]  }
 0x479   :  { %v1062_v34 = vsel %vm373_vm3, %v1061_v32, %v1060_v33  ;;  %s1623_s6 = sshll.u32 %s2119_s2, 4  ;;  %s1624_s6 = int_to_ptr.vmem [resolvable:$true] %s1623_s6 }
 0x47a   :  { %v1064_v36 = vmul.f32 %v1062_v34, %v2313_v49  ;;  %s2093_s23 = scalar_lea.vmem %s1624_s6, 512  ;;  %p2098_p1 = scmp.lt.s32.totalorder %s1624_s6, %s1624_s6 }
 0x47b   :  { %p2094_p0 = scmp.ne.s32.totalorder %s1624_s6, %s2093_s23  ;;  %p2099_p2 = scmp.lt.s32.totalorder %s2093_s23, %s2093_s23 }
 0x47c   :  { %v1065_v37 = vadd.f32 %v1064_v36, %v1036_v35  ;;  %v1382_v35 = vld [vmem:[#allocation2 + $0xe] sm:$0x1]  ;;  %v1383_v36 = vld [vmem:[#allocation2 + $0x16] sm:$0x1] }
 0x47d   :  { %p2100_p3 = por %p2099_p2, %p2098_p1 }
 0x47e   :  { %vm1066_vm12 = vcmp.gt.f32.partialorder %v1065_v37, 1.0 }
 0x47f   :  { %v1706_v38 = vsel %vm1066_vm12, 1.0, %v2115_v2  ;;  %vm1717_vm13 = vmpackc.low %vm1066_vm12, %vm1066_vm12  ;;  %p2101_p4 = pnand %p2100_p3, %p2094_p0 }
 0x480   :  { %v1076_v40 = vrot.slane %v1706_v38, %v2320_v56  ;;  %1967 = vmatmul.mubr.msk.bf16.vlgmr.msra.gmra.mxu0 %vm1717_vm13, %v2118_v59  ;;  %v1207_v41 = vsub.f32 %v1065_v37, %v1706_v38  ;;  %v1384_v37 = vld [vmem:[#allocation2 + $0x1e] sm:$0x1] }
 0x481   :  { %2006 = vmatprep.mubr.msk.bf16.mxu0 %vm2116_vm0, %v2115_v2  ;;  %1991 = vmatpush3.bf16.msra.mxu0 %v2083_v52 }
 0x482   :  { %v1077_v43 = vcombine.high %v1076_v40, %v1076_v40  ;;  %v1084_v44 = vrot.slane %v1076_v40, %v2320_v56  ;;  %1707 = vst.sshfl [vmem:[#allocation3 + $0x4] sm:$0x1 pattern:$0x73625140] %v1076_v40  ;;  %1992 = vmatprep.subr.bf16.mxu0 %v2115_v2  ;;  %v1208_v15 = vmul.f32 %v1207_v41, %v2310_v42 }
 0x484   :  { %v1091_v45 = vrot.slane %v1077_v43, %v2320_v56  ;;  %v1092_v46 = vcombine.high %v1084_v44, %v1084_v44  ;;  %1708 = vst.sshfl [vmem:[#allocation3 + $0xc] sm:$0x1 pattern:$0x73625140] %v1077_v43  ;;  %v1381_v44 = vld [vmem:[#allocation2 + $0x6] sm:$0x1] }
 0x485   :  { %1993 = vmatpush3.bf16.msra.mxu0 %v2084_v53 }
 0x486   :  { %v1093_v47 = vcombine.high %v1091_v45, %v1091_v45  ;;  %1100 = vst [vmem:[#allocation3 + $0x14] sm:$0x1] %v1092_v46  ;;  %1994 = vmatprep.subr.bf16.mxu0 %v2115_v2 }
 0x488   :  { %1101 = vst [vmem:[#allocation3 + $0x1c] sm:$0x1] %v1093_v47 }
 0x489   :  { %1995 = vmatpush3.bf16.msra.mxu0 %v2085_v54 }
 0x48a   :  { %1996 = vmatprep.subr.bf16.mxu0 %v2115_v2 }
 0x48d   :  { %1997 = vmatpush3.bf16.msra.mxu0 %v2086_v55 }
 0x48e   :  { %1998 = vmatprep.subr.bf16.mxu0 %v2115_v2 }
 0x491   :  { %1999 = vmatpush3.bf16.msra.mxu0 %v2087_v27 }
 0x492   :  { %2000 = vmatprep.subr.bf16.mxu0 %v2115_v2 }
 0x495   :  { %2001 = vmatpush3.bf16.msra.mxu0 %v2088_v28 }
 0x496   :  { %2002 = vmatprep.subr.bf16.mxu0 %v2115_v2 }
 0x499   :  { %2003 = vmatpush3.bf16.msra.mxu0 %v2089_v29 }
 0x49a   :  { %2004 = vmatprep.subr.bf16.mxu0 %v2115_v2 }
 0x49d   :  { %2005 = vmatpush3.bf16.msra.mxu0 %v2090_v30 }
 0x540   :  { %v1201_v39 = vpop.f32.mrf.mxu0 }
 0x541   :  { %v1214_v57 = vrot.slane %v1201_v39, 1  ;;  %v1215_v58 = vrot.slane %v1201_v39, 2  ;;  %v1216_v60 = vrot.slane %v1201_v39, 3  ;;  %v1221_v7 = vadd.f32 %v1209_v5, %v1201_v39 }
 0x542   :  { %v1968_v0 = vpop.f32.mrf.mxu0 }
 0x543   :  { %v1222_v1 = vadd.f32 %v1214_v57, %v1210_v61  ;;  %v1223_v3 = vadd.f32 %v1215_v58, %v1211_v62  ;;  %v1224_v4 = vadd.f32 %v1216_v60, %v1212_v63 }
 0x544   :  { %v1204_v6 = vpop.f32.mrf.mxu0 }
 0x545   :  { %v1229_v8 = vrot.slane %v1222_v1, 7  ;;  %v1231_v9 = vrot.slane %v1223_v3, 6  ;;  %v1233_v12 = vrot.slane %v1224_v4, 5 }
 0x546   :  { %v1969_v10 = vpop.f32.mrf.mxu0 }
 0x547   :  { %v1230_v11 = vsel %vm367_vm1, %v1229_v8, %v1221_v7  ;;  %v1554_v7 = vld [vmem:[#allocation2 + $0xf] sm:$0x1]  ;;  %v1555_v8 = vld [vmem:[#allocation2 + $0x17] sm:$0x1] }
 0x548   :  { %v1232_v13 = vsel %vm370_vm2, %v1231_v9, %v1230_v11  ;;  %v1556_v9 = vld [vmem:[#allocation2 + $0x1f] sm:$0x1] }
 0x549   :  { %v1234_v14 = vsel %vm373_vm3, %v1233_v12, %v1232_v13  ;;  %v1553_v13 = vld [vmem:[#allocation2 + $0x7] sm:$0x1] }
 0x54a   :  { %v1236_v16 = vmul.f32 %v1234_v14, %v2313_v49 }
 0x54c   :  { %v1237_v17 = vadd.f32 %v1236_v16, %v1208_v15 }
 0x54e   :  { %vm1238_vm14 = vcmp.gt.f32.partialorder %v1237_v17, 1.0 }
 0x54f   :  { %v1719_v18 = vsel %vm1238_vm14, 1.0, %v2115_v2  ;;  %vm1730_vm15 = vmpackc.low %vm1238_vm14, %vm1238_vm14 }
 0x550   :  { %v1248_v20 = vrot.slane %v1719_v18, %v2320_v56  ;;  %1987 = vmatmul.mubr.msk.bf16.vlgmr.msra.gmra.mxu1 %vm1730_vm15, %v2118_v59  ;;  %v1379_v21 = vsub.f32 %v1237_v17, %v1719_v18 }
 0x552   :  { %v1249_v22 = vcombine.high %v1248_v20, %v1248_v20  ;;  %v1256_v23 = vrot.slane %v1248_v20, %v2320_v56  ;;  %1720 = vst.sshfl [vmem:[#allocation3 + $0x5] sm:$0x1 pattern:$0x73625140] %v1248_v20  ;;  %v1380_v54 = vmul.f32 %v1379_v21, %v2310_v42 }
 0x554   :  { %v1263_v24 = vrot.slane %v1249_v22, %v2320_v56  ;;  %v1264_v25 = vcombine.high %v1256_v23, %v1256_v23  ;;  %1721 = vst.sshfl [vmem:[#allocation3 + $0xd] sm:$0x1 pattern:$0x73625140] %v1249_v22 }
 0x556   :  { %v1265_v26 = vcombine.high %v1263_v24, %v1263_v24  ;;  %1272 = vst [vmem:[#allocation3 + $0x15] sm:$0x1] %v1264_v25 }
 0x558   :  { %1273 = vst [vmem:[#allocation3 + $0x1d] sm:$0x1] %v1265_v26 }
 0x610   :  { %v1373_v31 = vpop.f32.mrf.mxu1 }
 0x611   :  { %v1386_v32 = vrot.slane %v1373_v31, 1  ;;  %v1387_v33 = vrot.slane %v1373_v31, 2  ;;  %v1388_v34 = vrot.slane %v1373_v31, 3  ;;  %v1393_v46 = vadd.f32 %v1381_v44, %v1373_v31 }
 0x612   :  { %v1988_v38 = vpop.f32.mrf.mxu1 }
 0x613   :  { %v1394_v40 = vadd.f32 %v1386_v32, %v1382_v35  ;;  %v1395_v41 = vadd.f32 %v1387_v33, %v1383_v36  ;;  %v1396_v43 = vadd.f32 %v1388_v34, %v1384_v37 }
 0x614   :  { %v1376_v45 = vpop.f32.mrf.mxu1 }
 0x615   :  { %v1401_v47 = vrot.slane %v1394_v40, 7  ;;  %v1403_v48 = vrot.slane %v1395_v41, 6  ;;  %v1405_v51 = vrot.slane %v1396_v43, 5 }
 0x616   :  { %v1989_v50 = vpop.f32.mrf.mxu1 }
 0x617   :  { %v1402_v19 = vsel %vm367_vm1, %v1401_v47, %v1393_v46 }
 0x618   :  { %v1404_v52 = vsel %vm370_vm2, %v1403_v48, %v1402_v19 }
 0x619   :  { %v1406_v53 = vsel %vm373_vm3, %v1405_v51, %v1404_v52 }
 0x61a   :  { %v1408_v55 = vmul.f32 %v1406_v53, %v2313_v49 }
 0x61c   :  { %v1409_v39 = vadd.f32 %v1408_v55, %v1380_v54 }
 0x61e   :  { %vm1410_vm0 = vcmp.gt.f32.partialorder %v1409_v39, 1.0 }
 0x61f   :  { %v1732_v57 = vsel %vm1410_vm0, 1.0, %v2115_v2  ;;  %vm1743_vm4 = vmpackc.low %vm1410_vm0, %vm1410_vm0 }
 0x620   :  { %v1420_v58 = vrot.slane %v1732_v57, %v2320_v56  ;;  %2007 = vmatmul.mubr.msk.bf16.vlgmr.msra.gmra.mxu0 %vm1743_vm4, %v2118_v59  ;;  %v1551_v60 = vsub.f32 %v1409_v39, %v1732_v57 }
 0x622   :  { %v1421_v61 = vcombine.high %v1420_v58, %v1420_v58  ;;  %v1428_v62 = vrot.slane %v1420_v58, %v2320_v56  ;;  %1733 = vst.sshfl [vmem:[#allocation3 + $0x6] sm:$0x1 pattern:$0x73625140] %v1420_v58  ;;  %v1552_v24 = vmul.f32 %v1551_v60, %v2310_v42 }
 0x624   :  { %v1435_v63 = vrot.slane %v1421_v61, %v2320_v56  ;;  %v1436_v0 = vcombine.high %v1428_v62, %v1428_v62  ;;  %1734 = vst.sshfl [vmem:[#allocation3 + $0xe] sm:$0x1 pattern:$0x73625140] %v1421_v61 }
 0x626   :  { %v1437_v1 = vcombine.high %v1435_v63, %v1435_v63  ;;  %1444 = vst [vmem:[#allocation3 + $0x16] sm:$0x1] %v1436_v0 }
 0x628   :  { %1445 = vst [vmem:[#allocation3 + $0x1e] sm:$0x1] %v1437_v1 }
 0x6e0   :  { %v1545_v3 = vpop.f32.mrf.mxu0 }
 0x6e1   :  { %v1558_v4 = vrot.slane %v1545_v3, 1  ;;  %v1559_v5 = vrot.slane %v1545_v3, 2  ;;  %v1560_v6 = vrot.slane %v1545_v3, 3  ;;  %v1565_v15 = vadd.f32 %v1553_v13, %v1545_v3 }
 0x6e2   :  { %v2008_v59 = vpop.f32.mrf.mxu0 }
 0x6e3   :  { %v1566_v10 = vadd.f32 %v1558_v4, %v1554_v7  ;;  %v1567_v11 = vadd.f32 %v1559_v5, %v1555_v8  ;;  %v1568_v12 = vadd.f32 %v1560_v6, %v1556_v9 }
 0x6e4   :  { %v1548_v14 = vpop.f32.mrf.mxu0 }
 0x6e5   :  { %v1573_v16 = vrot.slane %v1566_v10, 7  ;;  %v1575_v17 = vrot.slane %v1567_v11, 6  ;;  %v1577_v21 = vrot.slane %v1568_v12, 5 }
 0x6e6   :  { %v2009_v18 = vpop.f32.mrf.mxu0 }
 0x6e7   :  { %v1574_v20 = vsel %vm367_vm1, %v1573_v16, %v1565_v15 }
 0x6e8   :  { %v1576_v22 = vsel %vm370_vm2, %v1575_v17, %v1574_v20 }
 0x6e9   :  { %v1578_v23 = vsel %vm373_vm3, %v1577_v21, %v1576_v22 }
 0x6ea   :  { %v1580_v25 = vmul.f32 %v1578_v23, %v2313_v49 }
 0x6ec   :  { %v1581_v26 = vadd.f32 %v1580_v25, %v1552_v24 }
 0x6ee   :  { %vm1582_vm5 = vcmp.gt.f32.partialorder %v1581_v26, 1.0 }
 0x6ef   :  { %v1745_v27 = vsel %vm1582_vm5, 1.0, %v2115_v2 }
 0x6f0   :  { %v1592_v28 = vrot.slane %v1745_v27, %v2320_v56 }
 0x6f2   :  { %v1593_v29 = vcombine.high %v1592_v28, %v1592_v28  ;;  %v1600_v30 = vrot.slane %v1592_v28, %v2320_v56  ;;  %1746 = vst.sshfl [vmem:[#allocation3 + $0x7] sm:$0x1 pattern:$0x73625140] %v1592_v28 }
 0x6f4   :  { %v1607_v31 = vrot.slane %v1593_v29, %v2320_v56  ;;  %v1608_v32 = vcombine.high %v1600_v30, %v1600_v30  ;;  %1747 = vst.sshfl [vmem:[#allocation3 + $0xf] sm:$0x1 pattern:$0x73625140] %v1593_v29 }
 0x6f6   :  { %v1609_v33 = vcombine.high %v1607_v31, %v1607_v31  ;;  %1616 = vst [vmem:[#allocation3 + $0x17] sm:$0x1] %v1608_v32 }
 0x6f8   :  { %1617 = vst [vmem:[#allocation3 + $0x1f] sm:$0x1] %v1609_v33 }
 0x6f9   :  { %2104 = shalt.err (!%p2101_p4)
}
 0x6fa   :  { %s2120_s24 = smov 128   ;;  %s2121_s25 = smov 8  }
 0x6fb   :  { %1629 = dma.vmem_to_hbm [thread:$0]  %s1624_s6, 512, %s2607_s8, [#allocation4], %s2120_s24, %s2120_s24, %s2121_s25  }
 0x6fc   :  { %2113 = dma.done.wait [#allocation4], 512  }
 0x6fd   :  { %2114 = vsyncadd [#allocation4], 4294966784 }
 0x6fe   :  { %1633 = vsyncpa [#allocation4], 1 }

</bundles_post_ra>
